<compile_context>
chip_gen: v7x
topology: tpu7x:2x2x1
jax: 0.10.0
libtpu: 0.0.40
codegen_flags: <defaults>
</compile_context>

<pallas_src>
import math
from functools import partial
from typing import NamedTuple

import jax
import jax.numpy as jnp
from jax.experimental import pallas as pl
from jax.experimental.pallas import tpu as pltpu


def _round_up(v: int, m: int) -> int:
    return (v + m - 1) // m * m


class _ProjConfig(NamedTuple):
    K: int
    N: int
    K_pad: int
    N_pad: int
    tk: int
    tn: int
    n_kshards: int


# --------------------------------------------------------------------------- #
# Kernel: K-accumulated MXU matmul producing one f32 partial-sum tile per
# (kshard, m-tile, n-tile).  Grid = (n_kshards, Mt, Nt, Ksteps_per_shard);
# the innermost K axis is the reduction ("arbitrary"), everything else is
# "parallel" (megacore-shardable).
# --------------------------------------------------------------------------- #
def _proj_matmul_kernel(x_ref, w_ref, o_ref, acc_ref):
    k = pl.program_id(3)

    @pl.when(k == 0)
    def _():
        acc_ref[...] = jnp.zeros_like(acc_ref)

    acc_ref[...] += jnp.dot(x_ref[...], w_ref[...],
                            preferred_element_type=jnp.float32)

    @pl.when(k == pl.num_programs(3) - 1)
    def _():
        o_ref[...] = acc_ref[...]


# --------------------------------------------------------------------------- #
# One-time weight preparation (call once at model init, NOT per forward).
# --------------------------------------------------------------------------- #
def prepare_dinov2_projector(w, b, *, max_tm: int = 128,
                             vmem_budget_bytes: int = 12 << 20):
    """w: (feature_dim, K) f32 torch Linear weight; b: (feature_dim,) f32."""
    N, K = int(w.shape[0]), int(w.shape[1])

    tn = min(_round_up(N, 128), 512)
    N_pad = _round_up(N, tn)

    # Size tk so 2x bf16 W tile + 2x bf16 x tile fit the conservative budget
    # (v5e-safe; v6e/v7x have more headroom).
    per_k_bytes = 2 * 2 * (tn + max_tm)          # double-buffer * bf16
    tk_max = max(128, (vmem_budget_bytes // per_k_bytes) // 128 * 128)

    K_ru = _round_up(K, 128)
    ksteps = pl.cdiv(K_ru, min(tk_max, K_ru))
    n_kshards = 2 if ksteps >= 2 else 1          # give v7x's 2nd TC some work
    ksteps = _round_up(ksteps, n_kshards)
    tk = _round_up(pl.cdiv(K_ru, ksteps), 128)
    K_pad = tk * ksteps

    # Hoisted, cached weight prep: transpose + bf16 cast + zero-pad + rowsum.
    w_p = jnp.zeros((K_pad, N_pad), dtype=jnp.bfloat16)
    w_p = w_p.at[:K, :N].set(jnp.asarray(w).T.astype(jnp.bfloat16))
    rowsum_w = jnp.sum(jnp.asarray(w).astype(jnp.float32), axis=1)   # (N,)
    bias = jnp.asarray(b).astype(jnp.float32)

    cfg = _ProjConfig(K=K, N=N, K_pad=K_pad, N_pad=N_pad,
                      tk=tk, tn=tn, n_kshards=n_kshards)
    return w_p, rowsum_w, bias, cfg


# --------------------------------------------------------------------------- #
# Per-call forward: preprocess-stats (tiny XLA reduction) + fused matmul
# kernel + tiny epilogue.
# --------------------------------------------------------------------------- #
@partial(jax.jit, static_argnums=(4,))
def dinov2_encoder_forward(x, w_p, rowsum_w, bias, cfg: _ProjConfig):
    """x: (B, C, H, W) uint8 in [0, 255]  ->  (B, feature_dim) float32."""
    B = x.shape[0]
    K = math.prod(x.shape[1:])
    assert K == cfg.K, (K, cfg.K)
    x_flat = x.reshape(B, K)

    # ---- global statistics of y = x/255*2 - 1 (torch .std() is unbiased) ----
    sfac = jnp.float32(2.0 / 255.0)
    n_elems = B * K
    y = x_flat.astype(jnp.float32) * sfac - 1.0
    y_mean = jnp.mean(y)
    y_std = jnp.sqrt(jnp.sum((y - y_mean) ** 2) / (n_elems - 1))

    a = sfac / y_std                       # normalized pixel = a*raw + c
    c = (-1.0 - y_mean) / y_std
    fused_bias = c * rowsum_w + bias       # (N,)  -- rowsum_w is precomputed

    # ---- M tiling (bf16 LHS: 16-sublane-friendly, capped at 128) ------------
    if B <= 128:
        tm = _round_up(B, 16)
        M_pad = tm
    else:
        tm = 128
        M_pad = _round_up(B, tm)

    # Cast x to bf16 once (exact for integers 0..255); no in-kernel cast chain.
    x_p = jnp.zeros((M_pad, cfg.K_pad), dtype=jnp.bfloat16)
    x_p = x_p.at[:B, :K].set(x_flat.astype(jnp.bfloat16))

    steps_per_shard = cfg.K_pad // (cfg.tk * cfg.n_kshards)
    grid = (cfg.n_kshards, M_pad // tm, cfg.N_pad // cfg.tn, steps_per_shard)

    partials = pl.pallas_call(
        _proj_matmul_kernel,
        out_shape=jax.ShapeDtypeStruct((cfg.n_kshards, M_pad, cfg.N_pad),
                                       jnp.float32),
        grid=grid,
        in_specs=[
            pl.BlockSpec((tm, cfg.tk),
                         lambda s, i, j, k: (i, s * steps_per_shard + k)),
            pl.BlockSpec((cfg.tk, cfg.tn),
                         lambda s, i, j, k: (s * steps_per_shard + k, j)),
        ],
        out_specs=pl.BlockSpec((None, tm, cfg.tn),
                               lambda s, i, j, k: (s, i, j)),
        scratch_shapes=[pltpu.VMEM((tm, cfg.tn), jnp.float32)],
        compiler_params=pltpu.CompilerParams(
            dimension_semantics=("parallel", "parallel", "parallel",
                                 "arbitrary")),
        cost_estimate=pl.CostEstimate(
            flops=2 * M_pad * cfg.K_pad * cfg.N_pad,
            transcendentals=0,
            bytes_accessed=(cfg.K_pad * cfg.N_pad * 2
                            + M_pad * cfg.K_pad * 2
                            + cfg.n_kshards * M_pad * cfg.N_pad * 4)),
    )(x_p, w_p)

    # ---- tiny epilogue: reduce K shards, fold normalization + bias, ReLU ----
    acc = jnp.sum(partials, axis=0)                          # (M_pad, N_pad)
    out = jnp.maximum(acc[:B, :cfg.N] * a + fused_bias[None, :], 0.0)
    return out


if __name__ == "__main__":
    key = jax.random.PRNGKey(0)
    k1, k2, k3 = jax.random.split(key, 3)

    # Small shapes consistent with the module: RGB image batch, feature_dim=64.
    B, C, H, W_img = 2, 3, 16, 16
    feature_dim = 64
    K = C * H * W_img

    x = jax.random.randint(k1, (B, C, H, W_img), 0, 256,
                           dtype=jnp.int32).astype(jnp.uint8)
    w = jax.random.normal(k2, (feature_dim, K), dtype=jnp.float32) * 0.02
    b = jax.random.normal(k3, (feature_dim,), dtype=jnp.float32) * 0.01

    # One-time weight prep (cached across forward calls).
    w_p, rowsum_w, bias, cfg = prepare_dinov2_projector(w, b)

    out = dinov2_encoder_forward(x, w_p, rowsum_w, bias, cfg)
    out = jax.block_until_ready(out)

    # Pure-JAX reference with the original (unfused) torch semantics.
    xf = x.reshape(B, K).astype(jnp.float32)
    y = xf * (2.0 / 255.0) - 1.0
    mu = jnp.mean(y)
    sd = jnp.sqrt(jnp.sum((y - mu) ** 2) / (y.size - 1))   # unbiased (torch .std())
    yn = (y - mu) / sd
    ref = jnp.maximum(jnp.dot(yn, w.T, preferred_element_type=jnp.float32) + b, 0.0)

    assert out.shape == (B, feature_dim), out.shape
    if not bool(jnp.allclose(out, ref, rtol=2e-2, atol=2e-2)):
        raise AssertionError(
            f"mismatch vs reference, max abs err = "
            f"{float(jnp.max(jnp.abs(out - ref)))}")

    print("KERNEL_OK")
</pallas_src>

<mosaic_0001>
module attributes {stable_mosaic.version = 11 : i64} {
  func.func @_proj_matmul_kernel(%arg0: i32, %arg1: i32, %arg2: i32, %arg3: i32, %arg4: memref<16x768xbf16, #tpu.memory_space<vmem>>, %arg5: memref<768x128xbf16, #tpu.memory_space<vmem>>, %arg6: memref<1x16x128xf32, #tpu.memory_space<vmem>>, %arg7: memref<16x128xf32, #tpu.memory_space<vmem>>) attributes {dimension_semantics = [#tpu.dimension_semantics<parallel>, #tpu.dimension_semantics<parallel>, #tpu.dimension_semantics<parallel>, #tpu.dimension_semantics<arbitrary>], iteration_bounds = array<i64: 1, 1, 1, 1>, scalar_prefetch = 0 : i64, scratch_operands = 1 : i64, tpu.core_type = #tpu.core_type<tc>, window_params = [{transform_indices = @transform_0, window_bounds = array<i64: 16, 768>}, {transform_indices = @transform_1, window_bounds = array<i64: 768, 128>}, {transform_indices = @transform_2, window_bounds = array<i64: 1, 16, 128>}]} {
    %c0_i32 = arith.constant 0 : i32
    %0 = arith.cmpi eq, %arg3, %c0_i32 : i32
    %1 = arith.extui %0 : i1 to i32
    %c0_i32_0 = arith.constant 0 : i32
    %2 = arith.cmpi ne, %1, %c0_i32_0 : i32
    scf.if %2 {
      %cst_10 = arith.constant 0.000000e+00 : f32
      %12 = vector.broadcast %cst_10 : f32 to vector<16x128xf32>
      %c0_11 = arith.constant 0 : index
      %c0_12 = arith.constant 0 : index
      %13 = vector.load %arg7[%c0_11, %c0_12] : memref<16x128xf32, #tpu.memory_space<vmem>>, vector<16x128xf32>
      tpu.vector_store %arg7[%c0_11, %c0_12], %12 {strides = array<i32>} : memref<16x128xf32, #tpu.memory_space<vmem>>, vector<16x128xf32>,
    } else {
    }
    %c0 = arith.constant 0 : index
    %c0_1 = arith.constant 0 : index
    %3 = vector.load %arg7[%c0, %c0_1] : memref<16x128xf32, #tpu.memory_space<vmem>>, vector<16x128xf32>
    %c0_2 = arith.constant 0 : index
    %c0_3 = arith.constant 0 : index
    %4 = vector.load %arg4[%c0_2, %c0_3] : memref<16x768xbf16, #tpu.memory_space<vmem>>, vector<16x768xbf16>
    %c0_4 = arith.constant 0 : index
    %c0_5 = arith.constant 0 : index
    %5 = vector.load %arg5[%c0_4, %c0_5] : memref<768x128xbf16, #tpu.memory_space<vmem>>, vector<768x128xbf16>
    %cst = arith.constant dense<0.000000e+00> : vector<16x128xf32>
    %6 = tpu.matmul %4, %5, %cst {dimension_numbers = #tpu.dot_dimension_numbers<[1], [0], [0], [1], [0, 0, 1, 1], [], []>} : vector<16x768xbf16>, vector<768x128xbf16>, vector<16x128xf32> -> vector<16x128xf32>
    %7 = arith.addf %3, %6 : vector<16x128xf32>
    %c0_6 = arith.constant 0 : index
    %c0_7 = arith.constant 0 : index
    %8 = vector.load %arg7[%c0_6, %c0_7] : memref<16x128xf32, #tpu.memory_space<vmem>>, vector<16x128xf32>
    tpu.vector_store %arg7[%c0_6, %c0_7], %7 {strides = array<i32>} : memref<16x128xf32, #tpu.memory_space<vmem>>, vector<16x128xf32>,
    %c0_i32_8 = arith.constant 0 : i32
    %9 = arith.cmpi eq, %arg3, %c0_i32_8 : i32
    %10 = arith.extui %9 : i1 to i32
    %c0_i32_9 = arith.constant 0 : i32
    %11 = arith.cmpi ne, %10, %c0_i32_9 : i32
    scf.if %11 {
      %c0_10 = arith.constant 0 : index
      %c0_11 = arith.constant 0 : index
      %12 = vector.load %arg7[%c0_10, %c0_11] : memref<16x128xf32, #tpu.memory_space<vmem>>, vector<16x128xf32>
      %c0_12 = arith.constant 0 : index
      %c0_13 = arith.constant 0 : index
      %c0_14 = arith.constant 0 : index
      %13 = vector.load %arg6[%c0_12, %c0_13, %c0_14] : memref<1x16x128xf32, #tpu.memory_space<vmem>>, vector<1x16x128xf32>
      %14 = vector.shape_cast %13 : vector<1x16x128xf32> to vector<16x128xf32>
      %15 = vector.shape_cast %12 : vector<16x128xf32> to vector<1x16x128xf32>
      tpu.vector_store %arg6[%c0_12, %c0_13, %c0_14], %15 {strides = array<i32>} : memref<1x16x128xf32, #tpu.memory_space<vmem>>, vector<1x16x128xf32>,
    } else {
    }
    return
  }
  func.func @transform_0(%arg0: i32, %arg1: i32, %arg2: i32, %arg3: i32) -> (i32, i32) {
    %c1_i32 = arith.constant 1 : i32
    %0 = arith.muli %arg0, %c1_i32 : i32
    %1 = arith.addi %0, %arg3 : i32
    %c0_i32 = arith.constant 0 : i32
    return %arg1, %1 : i32, i32
  }
  func.func @transform_1(%arg0: i32, %arg1: i32, %arg2: i32, %arg3: i32) -> (i32, i32) {
    %c1_i32 = arith.constant 1 : i32
    %0 = arith.muli %arg0, %c1_i32 : i32
    %1 = arith.addi %0, %arg3 : i32
    %c0_i32 = arith.constant 0 : i32
    return %1, %arg2 : i32, i32
  }
  func.func @transform_2(%arg0: i32, %arg1: i32, %arg2: i32, %arg3: i32) -> (i32, i32, i32) {
    %c0_i32 = arith.constant 0 : i32
    return %arg0, %arg1, %arg2 : i32, i32, i32
  }
}

</mosaic_0001>

<bundles_post_ra>
// kernel: dinov2_encoder_forward.1
= control target key start
LH: loop header
LB: loop body
LE: loop exit
PB: predicated region body
PF: predicated region fallthrough
CT: control target
= control target key end

     0   :  { %7 = vsyncpa [#allocation4], 0  ;;  %s831_s9 = smov [#allocation3]   ;;  %s885_s0 = inlined_call_operand.vmem [shape: bf16[16,768], index: 0, kind: input, shape index: {}]   ;;  %s886_s1 = inlined_call_operand.hbm [shape: bf16[768,128], index: 1, kind: input, shape index: {}]   ;;  %s887_s2 = inlined_call_operand.vmem [shape: f32[1,16,128], index: 2, kind: output, shape index: {}]  }
   0x1   :  { %s27_s10 = sshll.u32 %s831_s9, 4  ;;  %s807_s13 = scalar_lea.hbm %s886_s1, 6144  ;;  %s28_s10 = int_to_ptr.vmem [resolvable:$true] %s27_s10 }
   0x2   :  { %p808_p0 = scmp.ne.s32.totalorder %s886_s1, %s807_s13  ;;  %p811_p1 = scmp.lt.u32.totalorder %s807_s13, %s886_s1 }
   0x4   :  { %p813_p2 = pnand %p811_p1, %p808_p0 }
   0x6   :  { %816 = shalt.err (!%p813_p2)
}
   0x7   :  { %s817_s18 = scalar_lea.vmem %s28_s10, 6144  ;;  %p822_p4 = scmp.lt.s32.totalorder %s28_s10, %s28_s10 }
   0x8   :  { %p818_p3 = scmp.ne.s32.totalorder %s28_s10, %s817_s18  ;;  %p823_p5 = scmp.lt.s32.totalorder %s817_s18, %s817_s18 }
   0xa   :  { %p824_p6 = por %p823_p5, %p822_p4 }
   0xc   :  { %p825_p7 = pnand %p824_p6, %p818_p3 }
   0xe   :  { %828 = shalt.err (!%p825_p7)
}
   0xf   :  { %s832_s19 = smov 64   ;;  %s833_s20 = smov 4  }
  0x10   :  { %33 = dma.hbm_to_vmem [thread:$0]  %s886_s1, 6144, %s28_s10, [#allocation4], %s832_s19, %s832_s19, %s833_s20  }
  0x11   :  { %829 = dma.done.wait [#allocation4], 6144  }
  0x12   :  { %830 = vsyncadd [#allocation4], 4294961152  ;;  %v750_v0 = vld [vmem:[#allocation3 + $0x40] sm:$0xff]   ;;  %v754_v4 = vld [vmem:[#allocation3 + $0x48] sm:$0xff]  }
  0x13   :  { %v751_v1 = vld [vmem:[#allocation3 + $0xc0] sm:$0xff]   ;;  %681 = vmatprep.subr.bf16.mxu0 %v750_v0  ;;  %v755_v5 = vld [vmem:[#allocation3 + $0xc8] sm:$0xff]   ;;  %v758_v8 = vld [vmem:[#allocation3 + $0x50] sm:$0xff]  }
  0x14   :  { %v752_v2 = vld [vmem:[#allocation3] sm:$0xff]   ;;  %703 = vmatprep.subr.bf16.mxu1 %v751_v1  ;;  %v756_v6 = vld [vmem:[#allocation3 + $0x8] sm:$0xff]   ;;  %v759_v9 = vld [vmem:[#allocation3 + $0xd0] sm:$0xff]  }
  0x15   :  { %v753_v3 = vld [vmem:[#allocation3 + $0x80] sm:$0xff]   ;;  %682 = vmatpush3.bf16.msra.mxu0 %v752_v2  ;;  %v757_v7 = vld [vmem:[#allocation3 + $0x88] sm:$0xff]   ;;  %v760_v10 = vld [vmem:[#allocation3 + $0x10] sm:$0xff]  }
  0x16   :  { %704 = vmatpush3.bf16.msra.mxu1 %v753_v3  ;;  %683 = vmatprep.subr.bf16.mxu0 %v754_v4  ;;  %v761_v11 = vld [vmem:[#allocation3 + $0x90] sm:$0xff]   ;;  %v762_v12 = vld [vmem:[#allocation3 + $0x58] sm:$0xff]   ;;  %v766_v16 = vld [vmem:[#allocation3 + $0x60] sm:$0xff]  }
  0x17   :  { %705 = vmatprep.subr.bf16.mxu1 %v755_v5  ;;  %v763_v13 = vld [vmem:[#allocation3 + $0xd8] sm:$0xff]   ;;  %v767_v17 = vld [vmem:[#allocation3 + $0xe0] sm:$0xff]   ;;  %v770_v20 = vld [vmem:[#allocation3 + $0x68] sm:$0xff]  }
  0x18   :  { %v764_v14 = vld [vmem:[#allocation3 + $0x18] sm:$0xff]   ;;  %v768_v18 = vld [vmem:[#allocation3 + $0x20] sm:$0xff]   ;;  %v771_v21 = vld [vmem:[#allocation3 + $0xe8] sm:$0xff]  }
  0x19   :  { %684 = vmatpush3.bf16.msra.mxu0 %v756_v6  ;;  %v765_v15 = vld [vmem:[#allocation3 + $0x98] sm:$0xff]   ;;  %v769_v19 = vld [vmem:[#allocation3 + $0xa0] sm:$0xff]   ;;  %v772_v22 = vld [vmem:[#allocation3 + $0x28] sm:$0xff]  }
  0x1a   :  { %706 = vmatpush3.bf16.msra.mxu1 %v757_v7  ;;  %685 = vmatprep.subr.bf16.mxu0 %v758_v8  ;;  %v773_v23 = vld [vmem:[#allocation3 + $0xa8] sm:$0xff]   ;;  %v774_v24 = vld [vmem:[#allocation3 + $0x70] sm:$0xff]   ;;  %v778_v28 = vld [vmem:[#allocation3 + $0x78] sm:$0xff]  }
  0x1b   :  { %707 = vmatprep.subr.bf16.mxu1 %v759_v9  ;;  %v775_v25 = vld [vmem:[#allocation3 + $0xf0] sm:$0xff]   ;;  %v779_v29 = vld [vmem:[#allocation3 + $0xf8] sm:$0xff]   ;;  %v785_v34 = vld [vmem:[%s885_s0 + $0x8] ss:$24 sps:$4 sm:$0xff]  }
  0x1c   :  { %v776_v26 = vld [vmem:[#allocation3 + $0x30] sm:$0xff]   ;;  %v780_v30 = vld [vmem:[#allocation3 + $0x38] sm:$0xff]   ;;  %v787_v35 = vld [vmem:[%s885_s0 + $0xc] ss:$24 sps:$4 sm:$0xff]  }
  0x1d   :  { %686 = vmatpush3.bf16.msra.mxu0 %v760_v10  ;;  %v777_v27 = vld [vmem:[#allocation3 + $0xb0] sm:$0xff]   ;;  %v781_v31 = vld [vmem:[#allocation3 + $0xb8] sm:$0xff]   ;;  %v788_v36 = vld [vmem:[#allocation3 + $0x140] sm:$0xff]   ;;  %555 = vmatprep.mubr.bf16.mxu1 %v787_v35 }
  0x1e   :  { %708 = vmatpush3.bf16.msra.mxu1 %v761_v11  ;;  %687 = vmatprep.subr.bf16.mxu0 %v762_v12  ;;  %v782_v32 = vld [vmem:[%s885_s0] ss:$24 sps:$4 sm:$0xff]   ;;  %v784_v33 = vld [vmem:[%s885_s0 + $0x4] ss:$24 sps:$4 sm:$0xff]   ;;  %v790_v38 = vld [vmem:[#allocation3 + $0x148] sm:$0xff]  }
  0x1f   :  { %709 = vmatprep.subr.bf16.mxu1 %v763_v13  ;;  %514 = vmatprep.mubr.bf16.mxu0 %v784_v33  ;;  %v789_v37 = vld [vmem:[#allocation3 + $0x100] sm:$0xff]   ;;  %v791_v39 = vld [vmem:[#allocation3 + $0x108] sm:$0xff]   ;;  %v792_v40 = vld [vmem:[#allocation3 + $0x150] sm:$0xff]  }
  0x20   :  { %v793_v41 = vld [vmem:[#allocation3 + $0x110] sm:$0xff]   ;;  %v794_v42 = vld [vmem:[#allocation3 + $0x158] sm:$0xff]   ;;  %v796_v44 = vld [vmem:[#allocation3 + $0x160] sm:$0xff]  }
  0x21   :  { %688 = vmatpush3.bf16.msra.mxu0 %v764_v14  ;;  %v795_v43 = vld [vmem:[#allocation3 + $0x118] sm:$0xff]   ;;  %v797_v45 = vld [vmem:[#allocation3 + $0x120] sm:$0xff]   ;;  %v798_v46 = vld [vmem:[#allocation3 + $0x168] sm:$0xff]  }
  0x22   :  { %710 = vmatpush3.bf16.msra.mxu1 %v765_v15  ;;  %689 = vmatprep.subr.bf16.mxu0 %v766_v16  ;;  %v806_v47 = vld [vmem:[%s885_s0 + $0x14] ss:$24 sps:$4 sm:$0xff]   ;;  %v802_v51 = vld [vmem:[#allocation3 + $0x178] sm:$0xff]   ;;  %v804_v53 = vld [vmem:[%s885_s0 + $0x10] ss:$24 sps:$4 sm:$0xff]  }
  0x23   :  { %711 = vmatprep.subr.bf16.mxu1 %v767_v17  ;;  %v799_v48 = vld [vmem:[#allocation3 + $0x128] sm:$0xff]   ;;  %v800_v49 = vld [vmem:[#allocation3 + $0x170] sm:$0xff]   ;;  %v803_v52 = vld [vmem:[#allocation3 + $0x138] sm:$0xff]  }
  0x24   :  { %v801_v50 = vld [vmem:[#allocation3 + $0x130] sm:$0xff]  }
  0x25   :  { %690 = vmatpush3.bf16.msra.mxu0 %v768_v18 }
  0x26   :  { %712 = vmatpush3.bf16.msra.mxu1 %v769_v19  ;;  %691 = vmatprep.subr.bf16.mxu0 %v770_v20 }
  0x27   :  { %713 = vmatprep.subr.bf16.mxu1 %v771_v21 }
  0x29   :  { %692 = vmatpush3.bf16.msra.mxu0 %v772_v22 }
  0x2a   :  { %714 = vmatpush3.bf16.msra.mxu1 %v773_v23  ;;  %693 = vmatprep.subr.bf16.mxu0 %v774_v24 }
  0x2b   :  { %715 = vmatprep.subr.bf16.mxu1 %v775_v25 }
  0x2d   :  { %694 = vmatpush3.bf16.msra.mxu0 %v776_v26 }
  0x2e   :  { %716 = vmatpush3.bf16.msra.mxu1 %v777_v27  ;;  %695 = vmatprep.subr.bf16.mxu0 %v778_v28 }
  0x2f   :  { %717 = vmatprep.subr.bf16.mxu1 %v779_v29 }
  0x31   :  { %696 = vmatpush3.bf16.msra.mxu0 %v780_v30 }
  0x32   :  { %718 = vmatpush3.bf16.msra.mxu1 %v781_v31  ;;  %725 = vmatprep.subr.bf16.mxu0 %v788_v36 }
  0x34   :  { %515 = vmatmul.mubr.bf16.vlgmr.msra.gmra.mrb[0].mxu0 %v782_v32 }
  0x35   :  { %556 = vmatmul.mubr.bf16.vlgmr.msra.gmra.mrb[0].mxu1 %v785_v34  ;;  %726 = vmatpush3.bf16.msra.mxu0 %v789_v37 }
  0x36   :  { %727 = vmatprep.subr.bf16.mxu0 %v790_v38  ;;  %596 = vmatprep.mubr.bf16.mxu0 %v806_v47 }
  0x39   :  { %728 = vmatpush3.bf16.msra.mxu0 %v791_v39 }
  0x3a   :  { %729 = vmatprep.subr.bf16.mxu0 %v792_v40 }
  0x3d   :  { %730 = vmatpush3.bf16.msra.mxu0 %v793_v41 }
  0x3e   :  { %731 = vmatprep.subr.bf16.mxu0 %v794_v42 }
  0x41   :  { %732 = vmatpush3.bf16.msra.mxu0 %v795_v43 }
  0x42   :  { %733 = vmatprep.subr.bf16.mxu0 %v796_v44 }
  0x45   :  { %734 = vmatpush3.bf16.msra.mxu0 %v797_v45 }
  0x46   :  { %735 = vmatprep.subr.bf16.mxu0 %v798_v46 }
  0x49   :  { %736 = vmatpush3.bf16.msra.mxu0 %v799_v48 }
  0x4a   :  { %737 = vmatprep.subr.bf16.mxu0 %v800_v49 }
  0x4d   :  { %738 = vmatpush3.bf16.msra.mxu0 %v801_v50 }
  0x4e   :  { %739 = vmatprep.subr.bf16.mxu0 %v802_v51 }
  0x51   :  { %740 = vmatpush3.bf16.msra.mxu0 %v803_v52 }
  0x54   :  { %597 = vmatmul.mubr.bf16.vlgmr.msra.gmra.mrb[4].mxu0 %v804_v53 }
 0x107   :  { %v697_v54 = vpop.f32.mrb[0].mxu0 }
 0x108   :  { %v719_v55 = vpop.f32.mrb[0].mxu1  ;;  %v698_v56 = vpop.f32.mrb[1].mxu0 }
 0x109   :  { %v699_v57 = vadd.f32 %v698_v56, %v697_v54  ;;  %v720_v58 = vpop.f32.mrb[1].mxu1  ;;  %v700_v59 = vpop.f32.mrb[2].mxu0 }
 0x10a   :  { %v721_v60 = vadd.f32 %v720_v58, %v719_v55  ;;  %v722_v61 = vpop.f32.mrb[2].mxu1  ;;  %v701_v62 = vpop.f32.mrb[3].mxu0 }
 0x10b   :  { %v702_v63 = vadd.f32 %v701_v62, %v700_v59  ;;  %v723_v0 = vpop.f32.mrb[3].mxu1 }
 0x10c   :  { %v558_v1 = vadd.f32 %v721_v60, %v699_v57  ;;  %v724_v2 = vadd.f32 %v723_v0, %v722_v61 }
 0x10e   :  { %v561_v3 = vadd.f32 %v724_v2, %v702_v63 }
 0x127   :  { %v741_v4 = vpop.f32.mrb[4].mxu0 }
 0x128   :  { %v742_v5 = vpop.f32.mrb[5].mxu0 }
 0x129   :  { %v743_v6 = vadd.f32 %v742_v5, %v741_v4  ;;  %v744_v7 = vpop.f32.mrb[6].mxu0 }
 0x12a   :  { %v745_v8 = vpop.f32.mrb[7].mxu0 }
 0x12b   :  { %v599_v9 = vadd.f32 %v743_v6, %v558_v1  ;;  %v746_v10 = vadd.f32 %v745_v8, %v744_v7 }
 0x12d   :  { %614 = vst [vmem:[%s887_s2] sm:$0xff] %v599_v9  ;;  %v602_v11 = vadd.f32 %v746_v10, %v561_v3 }
 0x12f   :  { %615 = vst [vmem:[%s887_s2 + $0x8] sm:$0xff] %v602_v11 }
 0x130   :  { %620 = vsyncpa [#allocation4], 1 }

</bundles_post_ra>
